<compile_context>
chip_gen: v6e
topology: v6e:2x2x1
jax: 0.10.0
libtpu: 0.0.40
codegen_flags: <defaults>
</compile_context>

<pallas_src>
import functools

import jax
import jax.numpy as jnp
from jax import lax
from jax.experimental import pallas as pl
from jax.experimental.pallas import tpu as pltpu


def _round_up(a: int, b: int) -> int:
    return ((a + b - 1) // b) * b


def _cdiv(a: int, b: int) -> int:
    return (a + b - 1) // b


def _vmem_capacity_bytes() -> int:
    """Per-core VMEM capacity; conservative 64 MiB (v7x) fallback."""
    try:
        info = pltpu.get_tpu_info()
        cap = getattr(info, "vmem_capacity_bytes", None)
        if cap:
            return int(cap)
    except Exception:
        pass
    return 64 * 1024 * 1024


_VMEM_CAP = _vmem_capacity_bytes()
_VMEM_BUDGET = int(_VMEM_CAP * 0.70)   # budget for double-buffered tiles + scratch
_VMEM_LIMIT = int(_VMEM_CAP * 0.75)    # raised scoped-VMEM limit handed to Mosaic
_BIG_VMEM = _VMEM_CAP >= 100 * 1024 * 1024   # v5e / v6e (128 MiB) vs v7x (64 MiB)


def _sublane(dtype) -> int:
    # f32 -> 8, bf16 -> 16, int8/fp8 -> 32 rows per (packed) sublane tile.
    return max(8, 32 // jnp.dtype(dtype).itemsize)


def _vmem_estimate(tm, tn, tk, in_bytes, out_bytes, single_k) -> int:
    """Double-buffered x/w/bias/out tiles (+ f32 accumulator if K-tiled)."""
    x_b = 2 * tm * tk * in_bytes
    w_b = 2 * tn * tk * in_bytes
    b_b = 2 * tn * 4                      # bias handed to the kernel as f32
    o_b = 2 * tm * tn * out_bytes
    acc_b = 0 if single_k else tm * tn * 4
    return x_b + w_b + b_b + o_b + acc_b


# ---------------------------------------------------------------------------
# Kernels.  Weight tiles arrive in native (tn, tk) layout; dot_general contracts
# dim 1 of both operands (x[tm,tk] . w[tn,tk]^T) on the MXU with f32 accumulation.
# ---------------------------------------------------------------------------
_DNUMS = (((1,), (1,)), ((), ()))


def _linear_kernel_single(x_ref, w_ref, b_ref, o_ref):
    """K fully resident: no reduction axis, no accumulator scratch."""
    acc = lax.dot_general(
        x_ref[...], w_ref[...], dimension_numbers=_DNUMS,
        preferred_element_type=jnp.float32)
    o_ref[...] = (acc + b_ref[...]).astype(o_ref.dtype)


def _linear_kernel_ktiled(x_ref, w_ref, b_ref, o_ref, acc_ref):
    """K-tiled: reduction axis last, resident f32 accumulator."""
    k = pl.program_id(2)

    @pl.when(k == 0)
    def _():
        acc_ref[...] = jnp.zeros_like(acc_ref)

    acc_ref[...] += lax.dot_general(
        x_ref[...], w_ref[...], dimension_numbers=_DNUMS,
        preferred_element_type=jnp.float32)

    @pl.when(k == pl.num_programs(2) - 1)
    def _():
        o_ref[...] = (acc_ref[...] + b_ref[...]).astype(o_ref.dtype)


# ---------------------------------------------------------------------------
# Wrapper
# ---------------------------------------------------------------------------
@functools.partial(jax.jit, static_argnames=("tm", "tn", "tk", "max_k_resident"))
def column_parallel_linear(x, weight, bias=None, *, tm=None, tn=None, tk=None,
                           max_k_resident=None):
    """Y = x @ weight.T + bias  with a tiled Pallas matmul kernel.

    x:      (..., in_features)
    weight: (out_features, in_features)   (native PyTorch layout, NOT transposed)
    bias:   (out_features,) or None
    """
    out_features, in_features = weight.shape
    lead_shape = x.shape[:-1]
    x2d = x.reshape(-1, in_features)
    M, K = x2d.shape
    N = out_features

    in_bytes = jnp.dtype(x.dtype).itemsize
    out_bytes = in_bytes

    # Generation-aware tile preferences (clamped by the VMEM budget below).
    if tm is None:
        tm = 512
    if tn is None:
        tn = 1024 if _BIG_VMEM else 512
    if tk is None:
        tk = 2048 if _BIG_VMEM else 1024

    sub = _sublane(x.dtype)

    # Balanced M tiling (avoid padding M=300 all the way to 512, etc.).
    n_m = max(1, _cdiv(M, tm))
    tm_eff = min(_round_up(_cdiv(M, n_m), sub), _round_up(M, sub))
    tn_eff = min(_round_up(tn, 128), _round_up(N, 128))
    Kp = _round_up(K, 128)

    # Single-K (K fully VMEM-resident) vs K-tiled decision, gated on VMEM budget.
    single_k = (
        (max_k_resident is None or Kp <= max_k_resident)
        and _vmem_estimate(tm_eff, tn_eff, Kp, in_bytes, out_bytes, True)
        <= _VMEM_BUDGET
    )

    if single_k:
        tk_eff = Kp
    else:
        tk_eff = min(_round_up(tk, 128), Kp)
        if max_k_resident is not None:
            tk_eff = min(tk_eff, max(128, _round_up(max_k_resident, 128)))
        # Shrink tk, then tn, then tm until the double-buffered estimate fits.
        while (_vmem_estimate(tm_eff, tn_eff, tk_eff, in_bytes, out_bytes, False)
               > _VMEM_BUDGET and tk_eff > 128):
            tk_eff = max(128, ((tk_eff // 2) // 128) * 128)
        while (_vmem_estimate(tm_eff, tn_eff, tk_eff, in_bytes, out_bytes, False)
               > _VMEM_BUDGET and tn_eff > 128):
            tn_eff = max(128, ((tn_eff // 2) // 128) * 128)
        while (_vmem_estimate(tm_eff, tn_eff, tk_eff, in_bytes, out_bytes, False)
               > _VMEM_BUDGET and tm_eff > sub):
            tm_eff = max(sub, ((tm_eff // 2) // sub) * sub)
        Kp = _round_up(Kp, tk_eff)

    Mp = _round_up(M, tm_eff)
    Np = _round_up(N, tn_eff)

    # Zero-pad only when shapes are ragged; no transpose anywhere.
    if (Mp, Kp) != (M, K):
        x2d = jnp.pad(x2d, ((0, Mp - M), (0, Kp - K)))
    w = weight
    if (Np, Kp) != (N, K):
        w = jnp.pad(weight, ((0, Np - N), (0, Kp - K)))
    if bias is None:
        bias_f32 = jnp.zeros((1, Np), jnp.float32)
    else:
        bias_f32 = bias.astype(jnp.float32).reshape(1, N)
        if Np != N:
            bias_f32 = jnp.pad(bias_f32, ((0, 0), (0, Np - N)))

    n_i = Mp // tm_eff
    n_j = Np // tn_eff

    if single_k:
        # Pick the grid order that minimizes HBM re-streaming:
        #   M-outer: x read once, weight re-read n_i times.
        #   N-outer: weight read once, x re-read n_j times.
        w_stream = Np * Kp * in_bytes
        x_stream = Mp * Kp * in_bytes
        weight_outer = (w_stream + x_stream * n_j) < (x_stream + w_stream * n_i)

        if weight_outer:
            grid = (n_j, n_i)
            in_specs = [
                pl.BlockSpec((tm_eff, Kp), lambda j, i: (i, 0)),      # x
                pl.BlockSpec((tn_eff, Kp), lambda j, i: (j, 0)),      # weight (N,K)
                pl.BlockSpec((1, tn_eff), lambda j, i: (0, j)),       # bias (f32)
            ]
            out_specs = pl.BlockSpec((tm_eff, tn_eff), lambda j, i: (i, j))
        else:
            grid = (n_i, n_j)
            in_specs = [
                pl.BlockSpec((tm_eff, Kp), lambda i, j: (i, 0)),
                pl.BlockSpec((tn_eff, Kp), lambda i, j: (j, 0)),
                pl.BlockSpec((1, tn_eff), lambda i, j: (0, j)),
            ]
            out_specs = pl.BlockSpec((tm_eff, tn_eff), lambda i, j: (i, j))
        kernel = _linear_kernel_single
        scratch_shapes = []
        dim_sem = ("parallel", "parallel")
    else:
        grid = (n_i, n_j, Kp // tk_eff)
        in_specs = [
            pl.BlockSpec((tm_eff, tk_eff), lambda i, j, k: (i, k)),   # x
            pl.BlockSpec((tn_eff, tk_eff), lambda i, j, k: (j, k)),   # weight (N,K)
            pl.BlockSpec((1, tn_eff), lambda i, j, k: (0, j)),        # bias (f32)
        ]
        out_specs = pl.BlockSpec((tm_eff, tn_eff), lambda i, j, k: (i, j))
        kernel = _linear_kernel_ktiled
        scratch_shapes = [pltpu.VMEM((tm_eff, tn_eff), jnp.float32)]
        dim_sem = ("parallel", "parallel", "arbitrary")

    out = pl.pallas_call(
        kernel,
        out_shape=jax.ShapeDtypeStruct((Mp, Np), x.dtype),
        grid_spec=pltpu.PrefetchScalarGridSpec(
            num_scalar_prefetch=0,
            grid=grid,
            in_specs=in_specs,
            out_specs=out_specs,
            scratch_shapes=scratch_shapes,
        ),
        compiler_params=pltpu.CompilerParams(
            dimension_semantics=dim_sem,
            vmem_limit_bytes=_VMEM_LIMIT,
        ),
    )(x2d, w, bias_f32)

    out = out[:M, :N]
    return out.reshape(*lead_shape, N)


def init_column_parallel_linear_params(key, in_features, out_features,
                                       dtype=jnp.float32):
    """Match the module's __init__ (world_size=1): xavier_normal_ weight, zero bias."""
    std = (2.0 / (in_features + out_features)) ** 0.5
    weight = std * jax.random.normal(key, (out_features, in_features), dtype)
    bias = jnp.zeros((out_features,), dtype)
    return weight, bias


# TODO(synk): model-parallel collectives (copy_to/gather_from region) are identity
# at world_size == 1 and are not emitted; multi-chip sharding would need
# make_async_remote_copy-based gather which is out of scope here.

if __name__ == "__main__":
    key = jax.random.PRNGKey(0)
    k1, k2, k3, k4, k5, k6, k7 = jax.random.split(key, 7)

    # --- Test 1: tile-friendly shapes, module-style init (zero bias) ---
    in_features, out_features = 128, 256
    batch, seq = 2, 8
    x = jax.random.normal(k1, (batch, seq, in_features), jnp.float32)
    weight, bias = init_column_parallel_linear_params(k2, in_features, out_features)

    y = jax.block_until_ready(column_parallel_linear(x, weight, bias))
    y_ref = jnp.einsum("bsk,nk->bsn", x, weight) + bias
    assert y.shape == (batch, seq, out_features)
    assert jnp.allclose(y, y_ref, atol=1e-3, rtol=1e-3)

    # --- Test 2: ragged shapes (padding path) with nonzero bias ---
    in2, out2 = 96, 200
    x2 = jax.random.normal(k3, (3, 5, in2), jnp.float32)
    w2, _ = init_column_parallel_linear_params(k4, in2, out2)
    b2 = 0.1 * jax.random.normal(k5, (out2,), jnp.float32)

    y2 = jax.block_until_ready(column_parallel_linear(x2, w2, b2))
    y2_ref = jnp.einsum("bsk,nk->bsn", x2, w2) + b2
    assert y2.shape == (3, 5, out2)
    assert jnp.allclose(y2, y2_ref, atol=1e-3, rtol=1e-3)

    # --- Test 3: force the K-tiled (accumulator) path via max_k_resident ---
    in3, out3 = 256, 128
    x3 = jax.random.normal(k6, (2, 8, in3), jnp.float32)
    w3, _ = init_column_parallel_linear_params(k7, in3, out3)
    b3 = jnp.zeros((out3,), jnp.float32)

    y3 = jax.block_until_ready(
        column_parallel_linear(x3, w3, b3, max_k_resident=128))
    y3_ref = jnp.einsum("bsk,nk->bsn", x3, w3) + b3
    assert y3.shape == (2, 8, out3)
    assert jnp.allclose(y3, y3_ref, atol=1e-3, rtol=1e-3)

    print("KERNEL_OK")
</pallas_src>

<mosaic_0001>
module attributes {stable_mosaic.version = 11 : i64} {
  func.func @_linear_kernel_single(%arg0: i32, %arg1: i32, %arg2: memref<16x128xf32, #tpu.memory_space<vmem>>, %arg3: memref<256x128xf32, #tpu.memory_space<vmem>>, %arg4: memref<1x256xf32, #tpu.memory_space<vmem>>, %arg5: memref<16x256xf32, #tpu.memory_space<vmem>>) attributes {dimension_semantics = [#tpu.dimension_semantics<parallel>, #tpu.dimension_semantics<parallel>], iteration_bounds = array<i64: 1, 1>, scalar_prefetch = 0 : i64, scratch_operands = 0 : i64, tpu.core_type = #tpu.core_type<tc>, window_params = [{transform_indices = @transform_0, window_bounds = array<i64: 16, 128>}, {transform_indices = @transform_1, window_bounds = array<i64: 256, 128>}, {transform_indices = @transform_2, window_bounds = array<i64: 1, 256>}, {transform_indices = @transform_3, window_bounds = array<i64: 16, 256>}]} {
    %c0 = arith.constant 0 : index
    %c0_0 = arith.constant 0 : index
    %0 = vector.load %arg2[%c0, %c0_0] : memref<16x128xf32, #tpu.memory_space<vmem>>, vector<16x128xf32>
    %c0_1 = arith.constant 0 : index
    %c0_2 = arith.constant 0 : index
    %1 = vector.load %arg3[%c0_1, %c0_2] : memref<256x128xf32, #tpu.memory_space<vmem>>, vector<256x128xf32>
    %cst = arith.constant dense<0.000000e+00> : vector<16x256xf32>
    %2 = tpu.matmul %0, %1, %cst {dimension_numbers = #tpu.dot_dimension_numbers<[1], [1], [0], [0], [0, 0, 1, 0], [], []>} : vector<16x128xf32>, vector<256x128xf32>, vector<16x256xf32> -> vector<16x256xf32>
    %c0_3 = arith.constant 0 : index
    %c0_4 = arith.constant 0 : index
    %3 = vector.load %arg4[%c0_3, %c0_4] : memref<1x256xf32, #tpu.memory_space<vmem>>, vector<1x256xf32>
    %4 = vector.broadcast %3 : vector<1x256xf32> to vector<16x256xf32>
    %5 = arith.addf %2, %4 : vector<16x256xf32>
    %c0_5 = arith.constant 0 : index
    %c0_6 = arith.constant 0 : index
    %6 = vector.load %arg5[%c0_5, %c0_6] : memref<16x256xf32, #tpu.memory_space<vmem>>, vector<16x256xf32>
    tpu.vector_store %arg5[%c0_5, %c0_6], %5 {strides = array<i32>} : memref<16x256xf32, #tpu.memory_space<vmem>>, vector<16x256xf32>,
    return
  }
  func.func @transform_0(%arg0: i32, %arg1: i32) -> (i32, i32) {
    %c0_i32 = arith.constant 0 : i32
    %c0_i32_0 = arith.constant 0 : i32
    return %arg0, %c0_i32 : i32, i32
  }
  func.func @transform_1(%arg0: i32, %arg1: i32) -> (i32, i32) {
    %c0_i32 = arith.constant 0 : i32
    %c0_i32_0 = arith.constant 0 : i32
    return %arg1, %c0_i32 : i32, i32
  }
  func.func @transform_2(%arg0: i32, %arg1: i32) -> (i32, i32) {
    %c0_i32 = arith.constant 0 : i32
    %c0_i32_0 = arith.constant 0 : i32
    return %c0_i32, %arg1 : i32, i32
  }
  func.func @transform_3(%arg0: i32, %arg1: i32) -> (i32, i32) {
    %c0_i32 = arith.constant 0 : i32
    return %arg0, %arg1 : i32, i32
  }
}

</mosaic_0001>

<bundles_post_ra>
// kernel: column_parallel_linear.1
= control target key start
LH: loop header
LB: loop body
LE: loop exit
PB: predicated region body
PF: predicated region fallthrough
CT: control target
= control target key end

     0   :  { %8 = vsyncpa [#allocation3], 0  ;;  %s376_s0 = inlined_call_operand.hbm [shape: f32[16,128], index: 0, kind: input, shape index: {}]   ;;  %s377_s1 = inlined_call_operand.hbm [shape: f32[256,128], index: 1, kind: input, shape index: {}]   ;;  %s378_s2 = inlined_call_operand.vmem [shape: f32[1,256], index: 2, kind: input, shape index: {}]   ;;  %s379_s3 = inlined_call_operand.hbm [shape: f32[16,256], index: 3, kind: output, shape index: {}]  }
   0x1   :  { %9 = vsyncpa [#allocation6], 0 }
   0x2   :  { %10 = vsyncpa [#allocation4], 0  ;;  %s329_s12 = smov [#allocation2]  }
   0x3   :  { %s16_s13 = sshll.u32 %s329_s12, 4  ;;  %s17_s13 = int_to_ptr.vmem [resolvable:$true] %s16_s13 }
   0x4   :  { %s271_s14 = scalar_lea.vmem %s17_s13, 256  ;;  %p276_p1 = scmp.lt.s32.totalorder %s17_s13, %s17_s13 }
   0x5   :  { %p272_p0 = scmp.ne.s32.totalorder %s17_s13, %s271_s14  ;;  %p277_p2 = scmp.lt.s32.totalorder %s271_s14, %s271_s14 }
   0x7   :  { %p278_p3 = por %p277_p2, %p276_p1 }
   0x9   :  { %p279_p4 = pnand %p278_p3, %p272_p0 }
   0xb   :  { %282 = shalt.err (!%p279_p4)
}
   0xc   :  { %s330_s15 = smov 128   ;;  %s331_s16 = smov 8  }
   0xd   :  { %22 = dma.hbm_to_vmem [thread:$0]  %s376_s0, 256, %s17_s13, [#allocation3], %s330_s15, %s330_s15, %s331_s16  }
   0xe   :  { %s332_s19 = smov [#allocation5]  }
   0xf   :  { %s28_s20 = sshll.u32 %s332_s19, 4  ;;  %s29_s20 = int_to_ptr.vmem [resolvable:$true] %s28_s20 }
  0x10   :  { %s291_s21 = scalar_lea.vmem %s29_s20, 4096  ;;  %p296_p6 = scmp.lt.s32.totalorder %s29_s20, %s29_s20 }
  0x11   :  { %p292_p5 = scmp.ne.s32.totalorder %s29_s20, %s291_s21  ;;  %p297_p7 = scmp.lt.s32.totalorder %s291_s21, %s291_s21 }
  0x13   :  { %p298_p8 = por %p297_p7, %p296_p6 }
  0x15   :  { %p299_p9 = pnand %p298_p8, %p292_p5 }
  0x17   :  { %302 = shalt.err (!%p299_p9)
}
  0x18   :  { %34 = dma.hbm_to_vmem [thread:$0]  %s377_s1, 4096, %s29_s20, [#allocation6], %s330_s15, %s330_s15, %s331_s16  }
  0x19   :  { %323 = dma.done.wait [#allocation3], 256  }
  0x1a   :  { %324 = vsyncadd [#allocation3], 4294967040 }
  0x1b   :  { %325 = dma.done.wait [#allocation6], 4096  }
  0x1c   :  { %326 = vsyncadd [#allocation6], 4294963200  ;;  %v76_v0 = vld [vmem:[#allocation5 + $0xf8] sm:$0xff]  ;;  %v75_v2 = vld [vmem:[#allocation5 + $0xf0] sm:$0xff]  ;;  %v79_v34 = vlaneseq  ;;  %s333_s24 = smov [#allocation7]  }
  0x1d   :  { %v60_v1 = vld [vmem:[#allocation5 + $0x78] sm:$0xff]  ;;  %188 = vmatprep.subr.mxu0 %v76_v0  ;;  %224 = vmatprep.subr.mxu1 %v76_v0  ;;  %v59_v3 = vld [vmem:[#allocation5 + $0x70] sm:$0xff]  ;;  %v74_v4 = vld [vmem:[#allocation5 + $0xe8] sm:$0xff]  ;;  %s175_s25 = sshll.u32 %s333_s24, 4  ;;  %s176_s25 = int_to_ptr.vmem [resolvable:$true] %s175_s25 }
  0x1e   :  { %189 = vmatpush3.xpose.msra.mxu0 %v60_v1  ;;  %240 = vmatpush3.xpose.msra.mxu1 %v60_v1  ;;  %v58_v5 = vld [vmem:[#allocation5 + $0x68] sm:$0xff]  ;;  %v73_v6 = vld [vmem:[#allocation5 + $0xe0] sm:$0xff]  ;;  %v362_v7 = vld [vmem:[#allocation2] sm:$0xff]  ;;  %v80_v35 = vshrl.u32 %v79_v34, 7  ;;  %s303_s26 = scalar_lea.vmem %s176_s25, 512  ;;  %p308_p11 = scmp.lt.s32.totalorder %s176_s25, %s176_s25 }
  0x1f   :  { %190 = vmatprep.subr.mxu0 %v75_v2  ;;  %225 = vmatprep.subr.mxu1 %v75_v2  ;;  %v57_v8 = vld [vmem:[#allocation5 + $0x60] sm:$0xff]  ;;  %v364_v9 = vld [vmem:[#allocation2 + $0x8] sm:$0xff]  ;;  %v71_v12 = vld [vmem:[#allocation5 + $0xd0] sm:$0xff]  ;;  %p304_p10 = scmp.ne.s32.totalorder %s176_s25, %s303_s26  ;;  %p309_p12 = scmp.lt.s32.totalorder %s303_s26, %s303_s26 }
  0x20   :  { %v72_v10 = vld [vmem:[#allocation5 + $0xd8] sm:$0xff]  ;;  %220 = vmatprep.mubr.f32.mxu0 %v362_v7  ;;  %222 = vmatprep.mubr.f32.mxu1 %v364_v9  ;;  %v55_v13 = vld [vmem:[#allocation5 + $0x50] sm:$0xff]  ;;  %v70_v14 = vld [vmem:[#allocation5 + $0xc8] sm:$0xff]  ;;  %v81_v36 = vsub.s32 0, %v80_v35  ;;  %v85_v38 = vsub.s32 1, %v80_v35 }
  0x21   :  { %v56_v11 = vld [vmem:[#allocation5 + $0x58] sm:$0xff]  ;;  %v54_v15 = vld [vmem:[#allocation5 + $0x48] sm:$0xff]  ;;  %v69_v16 = vld [vmem:[#allocation5 + $0xc0] sm:$0xff]  ;;  %p310_p13 = por %p309_p12, %p308_p11 }
  0x22   :  { %191 = vmatpush3.xpose.msra.mxu0 %v59_v3  ;;  %241 = vmatpush3.xpose.msra.mxu1 %v59_v3  ;;  %v53_v17 = vld [vmem:[#allocation5 + $0x40] sm:$0xff]  ;;  %v68_v18 = vld [vmem:[#allocation5 + $0xb8] sm:$0xff]  ;;  %v67_v20 = vld [vmem:[#allocation5 + $0xb0] sm:$0xff] }
  0x23   :  { %192 = vmatprep.subr.mxu0 %v74_v4  ;;  %226 = vmatprep.subr.mxu1 %v74_v4  ;;  %v52_v19 = vld [vmem:[#allocation5 + $0x38] sm:$0xff]  ;;  %v51_v21 = vld [vmem:[#allocation5 + $0x30] sm:$0xff]  ;;  %v66_v22 = vld [vmem:[#allocation5 + $0xa8] sm:$0xff]  ;;  %p311_p0 = pnand %p310_p13, %p304_p10 }
  0x24   :  { %v50_v23 = vld [vmem:[#allocation5 + $0x28] sm:$0xff]  ;;  %v65_v24 = vld [vmem:[#allocation5 + $0xa0] sm:$0xff]  ;;  %v64_v26 = vld [vmem:[#allocation5 + $0x98] sm:$0xff] }
  0x25   :  { %v49_v25 = vld [vmem:[#allocation5 + $0x20] sm:$0xff]  ;;  %v48_v27 = vld [vmem:[#allocation5 + $0x18] sm:$0xff]  ;;  %v63_v28 = vld [vmem:[#allocation5 + $0x90] sm:$0xff] }
  0x26   :  { %193 = vmatpush3.xpose.msra.mxu0 %v58_v5  ;;  %242 = vmatpush3.xpose.msra.mxu1 %v58_v5  ;;  %v47_v29 = vld [vmem:[#allocation5 + $0x10] sm:$0xff]  ;;  %v62_v30 = vld [vmem:[#allocation5 + $0x88] sm:$0xff]  ;;  %v61_v32 = vld [vmem:[#allocation5 + $0x80] sm:$0xff] }
  0x27   :  { %194 = vmatprep.subr.mxu0 %v73_v6  ;;  %227 = vmatprep.subr.mxu1 %v73_v6  ;;  %v46_v31 = vld [vmem:[#allocation5 + $0x8] sm:$0xff]  ;;  %v45_v33 = vld [vmem:[#allocation5] sm:$0xff]  ;;  %v77_v37 = vld [vmem:[%s378_s2] sm:$0x3] }
  0x28   :  { %v82_v39 = vrot.slane %v77_v37, %v81_v36  ;;  %v86_v40 = vrot.slane %v77_v37, %v85_v38 }
  0x2a   :  { %195 = vmatpush3.xpose.msra.mxu0 %v57_v8  ;;  %243 = vmatpush3.xpose.msra.mxu1 %v57_v8 }
  0x2b   :  { %196 = vmatprep.subr.mxu0 %v72_v10  ;;  %228 = vmatprep.subr.mxu1 %v72_v10 }
  0x2e   :  { %197 = vmatpush3.xpose.msra.mxu0 %v56_v11  ;;  %244 = vmatpush3.xpose.msra.mxu1 %v56_v11 }
  0x2f   :  { %198 = vmatprep.subr.mxu0 %v71_v12  ;;  %229 = vmatprep.subr.mxu1 %v71_v12 }
  0x32   :  { %199 = vmatpush3.xpose.msra.mxu0 %v55_v13  ;;  %245 = vmatpush3.xpose.msra.mxu1 %v55_v13 }
  0x33   :  { %200 = vmatprep.subr.mxu0 %v70_v14  ;;  %230 = vmatprep.subr.mxu1 %v70_v14 }
  0x36   :  { %201 = vmatpush3.xpose.msra.mxu0 %v54_v15  ;;  %246 = vmatpush3.xpose.msra.mxu1 %v54_v15 }
  0x37   :  { %202 = vmatprep.subr.mxu0 %v69_v16  ;;  %231 = vmatprep.subr.mxu1 %v69_v16 }
  0x3a   :  { %203 = vmatpush3.xpose.msra.mxu0 %v53_v17  ;;  %247 = vmatpush3.xpose.msra.mxu1 %v53_v17 }
  0x3b   :  { %204 = vmatprep.subr.mxu0 %v68_v18  ;;  %232 = vmatprep.subr.mxu1 %v68_v18 }
  0x3e   :  { %205 = vmatpush3.xpose.msra.mxu0 %v52_v19  ;;  %248 = vmatpush3.xpose.msra.mxu1 %v52_v19 }
  0x3f   :  { %206 = vmatprep.subr.mxu0 %v67_v20  ;;  %233 = vmatprep.subr.mxu1 %v67_v20 }
  0x42   :  { %207 = vmatpush3.xpose.msra.mxu0 %v51_v21  ;;  %249 = vmatpush3.xpose.msra.mxu1 %v51_v21 }
  0x43   :  { %208 = vmatprep.subr.mxu0 %v66_v22  ;;  %234 = vmatprep.subr.mxu1 %v66_v22 }
  0x46   :  { %209 = vmatpush3.xpose.msra.mxu0 %v50_v23  ;;  %250 = vmatpush3.xpose.msra.mxu1 %v50_v23 }
  0x47   :  { %210 = vmatprep.subr.mxu0 %v65_v24  ;;  %235 = vmatprep.subr.mxu1 %v65_v24 }
  0x4a   :  { %211 = vmatpush3.xpose.msra.mxu0 %v49_v25  ;;  %251 = vmatpush3.xpose.msra.mxu1 %v49_v25 }
  0x4b   :  { %212 = vmatprep.subr.mxu0 %v64_v26  ;;  %236 = vmatprep.subr.mxu1 %v64_v26 }
  0x4e   :  { %213 = vmatpush3.xpose.msra.mxu0 %v48_v27  ;;  %252 = vmatpush3.xpose.msra.mxu1 %v48_v27 }
  0x4f   :  { %214 = vmatprep.subr.mxu0 %v63_v28  ;;  %237 = vmatprep.subr.mxu1 %v63_v28 }
  0x52   :  { %215 = vmatpush3.xpose.msra.mxu0 %v47_v29  ;;  %253 = vmatpush3.xpose.msra.mxu1 %v47_v29 }
  0x53   :  { %216 = vmatprep.subr.mxu0 %v62_v30  ;;  %238 = vmatprep.subr.mxu1 %v62_v30 }
  0x56   :  { %217 = vmatpush3.xpose.msra.mxu0 %v46_v31  ;;  %254 = vmatpush3.xpose.msra.mxu1 %v46_v31 }
  0x57   :  { %218 = vmatprep.subr.mxu0 %v61_v32  ;;  %239 = vmatprep.subr.mxu1 %v61_v32 }
  0x5a   :  { %219 = vmatpush3.xpose.msra.mxu0 %v45_v33  ;;  %255 = vmatpush3.xpose.msra.mxu1 %v45_v33 }
  0x5d   :  { %221 = vmatmul.mubr.f32.vlgmr.msra.gmra.mxu0 %v362_v7  ;;  %223 = vmatmul.mubr.f32.vlgmr.msra.gmra.mxu1 %v364_v9 }
 0x11d   :  { %v155_v41 = vpop.f32.mrf.mxu0  ;;  %v161_v42 = vpop.f32.mrf.mxu1 }
 0x11e   :  { %v156_v43 = vadd.f32 %v155_v41, %v82_v39  ;;  %v162_v44 = vadd.f32 %v161_v42, %v82_v39 }
 0x11f   :  { %v157_v45 = vpop.f32.mrf.mxu0  ;;  %v163_v46 = vpop.f32.mrf.mxu1 }
 0x120   :  { %166 = vst [vmem:[#allocation7] sm:$0xff] %v156_v43  ;;  %168 = vst [vmem:[#allocation7 + $0x10] sm:$0xff] %v162_v44  ;;  %v158_v47 = vadd.f32 %v157_v45, %v86_v40  ;;  %v164_v48 = vadd.f32 %v163_v46, %v86_v40 }
 0x122   :  { %167 = vst [vmem:[#allocation7 + $0x8] sm:$0xff] %v158_v47  ;;  %169 = vst [vmem:[#allocation7 + $0x18] sm:$0xff] %v164_v48 }
 0x123   :  { %314 = shalt.err (!%p311_p0)
}
 0x124   :  { %s334_s2 = smov 256   ;;  %s335_s27 = smov 16  }
 0x125   :  { %181 = dma.vmem_to_hbm [thread:$0]  %s176_s25, 512, %s379_s3, [#allocation4], %s334_s2, %s334_s2, %s335_s27  }
 0x126   :  { %327 = dma.done.wait [#allocation4], 512  }
 0x127   :  { %328 = vsyncadd [#allocation4], 4294966784 }
 0x128   :  { %185 = vsyncpa [#allocation3], 1 }
 0x129   :  { %186 = vsyncpa [#allocation6], 1 }
 0x12a   :  { %187 = vsyncpa [#allocation4], 1 }

</bundles_post_ra>
